<compile_context>
chip_gen: v6e
topology: v6e:2x2x1
jax: 0.10.0
libtpu: 0.0.40
codegen_flags: <defaults>
</compile_context>

<pallas_src>
import functools

import jax
import jax.numpy as jnp
from jax.experimental import pallas as pl
from jax.experimental.pallas import tpu as pltpu

TARGET_BLOCK_BYTES = 2 * 1024 * 1024    # ~2 MiB per grid step: safe on every gen
MIN_MULTI_STEP_BYTES = 512 * 1024       # above this, force multi-step grid
MIN_GRID_STEPS = 4                      # >= 4 steps -> pipeline overlap + 2 TCs

_SUBLANE = {4: 8, 2: 16, 1: 32}         # min second-minor tile per itemsize


def _act_centerer_kernel(bx_ref, by_ref, x_ref, o_ref, *, act):
    # bx_ref / by_ref: (1,) scalars in SMEM.
    bx = bx_ref[0]
    by = by_ref[0]
    # add-scalar (VPU) -> activation (EUP) -> add-scalar; all slack under HBM bound.
    o_ref[...] = act(x_ref[...] + bx) + by


def act_centerer(x, bx, by, act=jnp.tanh):
    """ActCenterer forward: act(x + bx) + by, for any input shape."""
    orig_shape = x.shape
    n = x.size
    itemsize = jnp.dtype(x.dtype).itemsize
    sub = _SUBLANE.get(itemsize, 8)

    # ---- lane choice: zero-copy reshape whenever n is 128-aligned ----------
    lane = None
    for cand in (1024, 512, 256, 128):
        if n % cand == 0:
            lane = cand
            break
    padded = lane is None
    if padded:
        # Truly ragged size: pad only up to the next 128-lane row (< 128 elems).
        lane = 128
        n_pad = pl.cdiv(n, lane) * lane
    else:
        n_pad = n
    rows = n_pad // lane

    xf = x.reshape(-1)
    if padded:
        xf = jnp.pad(xf, (0, n_pad - n))
    x2 = xf.reshape(rows, lane)

    # ---- tile_rows: ~2 MiB blocks, >= MIN_GRID_STEPS steps for larger arrays
    target_rows = max(sub, (TARGET_BLOCK_BYTES // (lane * itemsize)) // sub * sub)
    total_bytes = n_pad * itemsize
    if total_bytes > MIN_MULTI_STEP_BYTES:
        split_rows = max(sub, (rows // MIN_GRID_STEPS) // sub * sub)
        tile_rows = min(target_rows, split_rows)      # multiple of `sub`
    else:
        tile_rows = rows                              # single block == full array

    grid = (pl.cdiv(rows, tile_rows),)                # ragged last block is OK

    out2 = pl.pallas_call(
        functools.partial(_act_centerer_kernel, act=act),
        out_shape=jax.ShapeDtypeStruct((rows, lane), x.dtype),
        grid=grid,
        in_specs=[
            pl.BlockSpec(memory_space=pltpu.MemorySpace.SMEM),   # bx scalar
            pl.BlockSpec(memory_space=pltpu.MemorySpace.SMEM),   # by scalar
            pl.BlockSpec((tile_rows, lane), lambda i: (i, 0)),   # x tile
        ],
        out_specs=pl.BlockSpec((tile_rows, lane), lambda i: (i, 0)),
        compiler_params=pltpu.CompilerParams(
            dimension_semantics=("parallel",),   # shard steps across v7x's 2 TCs
        ),
    )(bx, by, x2)

    out = out2.reshape(-1)
    if padded:
        out = out[:n]
    return out.reshape(orig_shape)


if __name__ == "__main__":
    key = jax.random.PRNGKey(0)
    kx, kx2, kx3 = jax.random.split(key, 3)

    # Parameters: torch.zeros(1) in the module; perturb so centering does work.
    bx = jnp.zeros((1,), jnp.float32) + 0.25
    by = jnp.zeros((1,), jnp.float32) - 0.10

    # Case 1: small NCHW conv-style input, n is 1024-aligned (zero-copy path,
    # single full-array block).
    x = jax.random.normal(kx, (2, 4, 16, 16), dtype=jnp.float32)
    y = act_centerer(x, bx, by)
    jax.block_until_ready(y)
    y_ref = jnp.tanh(x + bx[0]) + by[0]
    assert y.shape == x.shape and y.dtype == x.dtype
    assert jnp.allclose(y, y_ref, atol=1e-5, rtol=1e-5)

    # Case 2: element count NOT 128-aligned (exercises the tail-only pad +
    # slice-back fallback).
    x2 = jax.random.normal(kx2, (2, 3, 7, 7), dtype=jnp.float32)
    y2 = act_centerer(x2, bx, by)
    jax.block_until_ready(y2)
    y2_ref = jnp.tanh(x2 + bx[0]) + by[0]
    assert y2.shape == x2.shape and y2.dtype == x2.dtype
    assert jnp.allclose(y2, y2_ref, atol=1e-5, rtol=1e-5)

    # Case 3: larger tensor (>512 KiB, 128-aligned but rows % tile_rows != 0)
    # -> multi-step pipelined grid with a ragged last block and no pad/slice.
    x3 = jax.random.normal(kx3, (8, 8, 56, 56), dtype=jnp.float32)
    y3 = act_centerer(x3, bx, by)
    jax.block_until_ready(y3)
    y3_ref = jnp.tanh(x3 + bx[0]) + by[0]
    assert y3.shape == x3.shape and y3.dtype == x3.dtype
    assert jnp.allclose(y3, y3_ref, atol=1e-5, rtol=1e-5)

    print("KERNEL_OK")
</pallas_src>

<mosaic_0001>
module attributes {stable_mosaic.version = 11 : i64} {
  func.func @_act_centerer_kernel(%arg0: i32, %arg1: memref<1xf32, #tpu.memory_space<smem>>, %arg2: memref<1xf32, #tpu.memory_space<smem>>, %arg3: memref<2x1024xf32, #tpu.memory_space<vmem>>, %arg4: memref<2x1024xf32, #tpu.memory_space<vmem>>) attributes {dimension_semantics = [#tpu.dimension_semantics<parallel>], iteration_bounds = array<i64: 1>, scalar_prefetch = 0 : i64, scratch_operands = 0 : i64, tpu.core_type = #tpu.core_type<tc>, window_params = [{transform_indices = @transform_0, window_bounds = array<i64: 1>}, {transform_indices = @transform_1, window_bounds = array<i64: 1>}, {transform_indices = @transform_2, window_bounds = array<i64: 2, 1024>}, {transform_indices = @transform_3, window_bounds = array<i64: 2, 1024>}]} {
    %c0 = arith.constant 0 : index
    %0 = memref.load %arg1[%c0] : memref<1xf32, #tpu.memory_space<smem>>
    %c0_0 = arith.constant 0 : index
    %1 = memref.load %arg2[%c0_0] : memref<1xf32, #tpu.memory_space<smem>>
    %c0_1 = arith.constant 0 : index
    %c0_2 = arith.constant 0 : index
    %2 = vector.load %arg3[%c0_1, %c0_2] : memref<2x1024xf32, #tpu.memory_space<vmem>>, vector<2x1024xf32>
    %3 = vector.broadcast %0 : f32 to vector<2x1024xf32>
    %4 = arith.addf %2, %3 : vector<2x1024xf32>
    %5 = math.tanh %4 : vector<2x1024xf32>
    %6 = vector.broadcast %1 : f32 to vector<2x1024xf32>
    %7 = arith.addf %5, %6 : vector<2x1024xf32>
    %c0_3 = arith.constant 0 : index
    %c0_4 = arith.constant 0 : index
    %8 = vector.load %arg4[%c0_3, %c0_4] : memref<2x1024xf32, #tpu.memory_space<vmem>>, vector<2x1024xf32>
    tpu.vector_store %arg4[%c0_3, %c0_4], %7 {strides = array<i32>} : memref<2x1024xf32, #tpu.memory_space<vmem>>, vector<2x1024xf32>,
    return
  }
  func.func @transform_0(%arg0: i32) -> i32 {
    %c0_i32 = arith.constant 0 : i32
    %c0_i32_0 = arith.constant 0 : i32
    return %c0_i32 : i32
  }
  func.func @transform_1(%arg0: i32) -> i32 {
    %c0_i32 = arith.constant 0 : i32
    %c0_i32_0 = arith.constant 0 : i32
    return %c0_i32 : i32
  }
  func.func @transform_2(%arg0: i32) -> (i32, i32) {
    %c0_i32 = arith.constant 0 : i32
    %c0_i32_0 = arith.constant 0 : i32
    return %arg0, %c0_i32 : i32, i32
  }
  func.func @transform_3(%arg0: i32) -> (i32, i32) {
    %c0_i32 = arith.constant 0 : i32
    %c0_i32_0 = arith.constant 0 : i32
    return %arg0, %c0_i32 : i32, i32
  }
}

</mosaic_0001>

<bundles_post_ra>
// kernel: tpu_custom_call.1
= control target key start
LH: loop header
LB: loop body
LE: loop exit
PB: predicated region body
PF: predicated region fallthrough
CT: control target
= control target key end

     0   :  { %10 = vsyncpa [#allocation5], 0  ;;  %s142_s0 = inlined_call_operand.<no memory space> [shape: f32[1], index: 0, kind: input, shape index: {}]   ;;  %s143_s1 = inlined_call_operand.<no memory space> [shape: f32[1], index: 1, kind: input, shape index: {}]   ;;  %s144_s2 = inlined_call_operand.hbm [shape: f32[2,1024], index: 2, kind: input, shape index: {}]   ;;  %s145_s3 = inlined_call_operand.hbm [shape: f32[2,1024], index: 3, kind: output, shape index: {}]  }
   0x1   :  { %11 = vsyncpa [#allocation6], 0  ;;  %s108_s12 = smov [#allocation4]  }
   0x2   :  { %s22_s13 = sshll.u32 %s108_s12, 4  ;;  %s23_s13 = int_to_ptr.vmem [resolvable:$true] %s22_s13 }
   0x3   :  { %s72_s14 = scalar_lea.vmem %s23_s13, 256  ;;  %p77_p1 = scmp.lt.s32.totalorder %s23_s13, %s23_s13 }
   0x4   :  { %p73_p0 = scmp.ne.s32.totalorder %s23_s13, %s72_s14  ;;  %p78_p2 = scmp.lt.s32.totalorder %s72_s14, %s72_s14 }
   0x6   :  { %p79_p3 = por %p78_p2, %p77_p1 }
   0x8   :  { %p80_p4 = pnand %p79_p3, %p73_p0 }
   0xa   :  { %83 = shalt.err (!%p80_p4)
}
   0xb   :  { %25 = dma.hbm_to_vmem [thread:$0]  %s144_s2, 256, %s23_s13, [#allocation5]  }
   0xc   :  { %104 = dma.done.wait [#allocation5], 256  }
   0xd   :  { %105 = vsyncadd [#allocation5], 4294967040  ;;  %v33_v0 = vstv %s142_s0  ;;  %v31_v1 = vld [vmem:[#allocation4] sm:$0xff]  ;;  %v32_v2 = vld [vmem:[#allocation4 + $0x8] sm:$0xff]  ;;  %v38_v5 = vstv %s143_s1  ;;  %s109_s21 = smov [#allocation7]  }
   0xe   :  { %v34_v3 = vadd.f32 %v33_v0, %v31_v1  ;;  %v35_v4 = vadd.f32 %v33_v0, %v32_v2  ;;  %s49_s22 = sshll.u32 %s109_s21, 4  ;;  %s50_s22 = int_to_ptr.vmem [resolvable:$true] %s49_s22 }
   0xf   :  { %s84_s0 = scalar_lea.vmem %s50_s22, 256  ;;  %p89_p6 = scmp.lt.s32.totalorder %s50_s22, %s50_s22 }
  0x10   :  { %60 = vtanh.f32 %v34_v3  ;;  %p85_p5 = scmp.ne.s32.totalorder %s50_s22, %s84_s0  ;;  %p90_p7 = scmp.lt.s32.totalorder %s84_s0, %s84_s0 }
  0x11   :  { %62 = vtanh.f32 %v35_v4 }
  0x12   :  { %p91_p8 = por %p90_p7, %p89_p6 }
  0x14   :  { %p92_p9 = pnand %p91_p8, %p85_p5 }
  0x1d   :  { %v61_v6 = vpop.eup %60 }
  0x1e   :  { %v63_v7 = vpop.eup %62  ;;  %v39_v8 = vadd.f32 %v61_v6, %v38_v5 }
  0x1f   :  { %v40_v9 = vadd.f32 %v63_v7, %v38_v5 }
  0x20   :  { %41 = vst [vmem:[#allocation7] sm:$0xff] %v39_v8 }
  0x21   :  { %42 = vst [vmem:[#allocation7 + $0x8] sm:$0xff] %v40_v9 }
  0x22   :  { %95 = shalt.err (!%p92_p9)
}
  0x23   :  { %52 = dma.vmem_to_hbm [thread:$0]  %s50_s22, 256, %s145_s3, [#allocation6]  }
  0x24   :  { %106 = dma.done.wait [#allocation6], 256  }
  0x25   :  { %107 = vsyncadd [#allocation6], 4294967040 }
  0x26   :  { %56 = vsyncpa [#allocation5], 1 }
  0x27   :  { %57 = vsyncpa [#allocation6], 1 }

</bundles_post_ra>
